<compile_context>
chip_gen: v6e
topology: v6e:2x2x1
jax: 0.10.0
libtpu: 0.0.40
codegen_flags: <defaults>
</compile_context>

<pallas_src>
import functools

import jax
import jax.numpy as jnp
from jax.experimental import pallas as pl
from jax.experimental.pallas import tpu as pltpu


def _loss_kernel(real_ref, fake_ref, mean_ref, logvar_ref,
                 anchor_ref, pos_ref, neg_ref, masks_ref, sel_ref,
                 out_ref, *,
                 n_bce_elems, kl_beta, triplet_beta, triplet_margin,
                 mask_regularization_beta, num_attributes, compute_triplet):
    # ---- reconstruction: binary cross entropy, mean over all elements ----
    real = real_ref[...]                      # (rows, 128) lane-dense
    fake = fake_ref[...]
    # matches torch BCE: log terms clamped at -100; zero padding contributes 0
    log_f = jnp.maximum(jnp.log(fake), -100.0)
    log_1mf = jnp.maximum(jnp.log(1.0 - fake), -100.0)
    bce = -(real * log_f + (1.0 - real) * log_1mf)
    recon = jnp.sum(bce) * (1.0 / float(n_bce_elems))

    # ---- KL divergence: -0.5 * mean(1 + logvar - mean^2 - exp(logvar)) ----
    mu = mean_ref[...]                        # (B, L)
    lv = logvar_ref[...]                      # (B, L)
    kl = -0.5 * (jnp.sum(1.0 + lv - mu * mu - jnp.exp(lv))
                 * (1.0 / float(mu.size)))

    # ---- masked triplet loss ----
    if compute_triplet:
        a = anchor_ref[...]                   # (T, L)
        p = pos_ref[...]
        n = neg_ref[...]
        m = masks_ref[...]                    # (A, L)
        sel = sel_ref[...]                    # (T, 1) float attribute-row id
        # static one-hot gather: mg[t, :] = masks[row_idx[t], :]
        mg = jnp.where(sel == 0.0, 1.0, 0.0) * m[0:1, :]
        for att in range(1, num_attributes):
            mg = mg + jnp.where(sel == float(att), 1.0, 0.0) * m[att:att + 1, :]
        # bmm(mask[1,L], |a-p|[L,1]) - bmm(mask[1,L], |a-n|[L,1])
        #   == sum_L mask * (|a-p| - |a-n|)
        w = mg * (jnp.abs(a - p) - jnp.abs(a - n))          # (T, L)
        lat = w.shape[1]
        if lat <= 4:
            # tiny latent dim: unrolled slice-adds on the VPU
            diff = w[:, 0:1]
            for j in range(1, lat):
                diff = diff + w[:, j:j + 1]
        else:
            # larger latent dim: single lane-axis XLU reduce
            diff = jnp.sum(w, axis=1, keepdims=True)
        trip_vec = jnp.maximum(diff + triplet_margin, 0.0)  # (T, 1)
        trip = jnp.sum(trip_vec) * (1.0 / float(trip_vec.shape[0]))
    else:
        trip = jnp.float32(0.0)

    # ---- mask regularization: mean over rows of the L1 norm ----
    maskreg = (jnp.sum(jnp.abs(masks_ref[...]))
               * (1.0 / float(num_attributes)))

    # ---- weighted final loss ----
    final = (recon
             + kl_beta * kl
             + triplet_beta * trip
             + mask_regularization_beta * maskreg)

    # single packed SMEM output
    out_ref[0] = final
    out_ref[1] = trip
    out_ref[2] = recon
    out_ref[3] = kl
    out_ref[4] = maskreg
    out_ref[5] = jnp.float32(0.0)
    out_ref[6] = jnp.float32(0.0)
    out_ref[7] = jnp.float32(0.0)


def _flatten_lane_dense(x):
    """Reshape to (rows, 128); pad with zeros (BCE-neutral) if needed."""
    flat = x.reshape(-1)
    n = flat.shape[0]
    pad = (-n) % 128
    if pad:
        flat = jnp.pad(flat, (0, pad))
    return flat.reshape((n + pad) // 128, 128)


@functools.partial(jax.jit, static_argnames=(
    "attribute_index", "attributes", "kl_beta", "triplet_beta",
    "triplet_margin", "mask_regularization_beta"))
def _forward(real_data, fake_data, mean, logvar, anchor, positive, negative,
             masks, *, attribute_index, attributes, kl_beta, triplet_beta,
             triplet_margin, mask_regularization_beta):
    # attribute -> mask row index mapping (matches self.attribute_to_index);
    # baked into a compile-time (T, 1) selector constant, gathered in-kernel.
    attr_to_idx = {int(x): i for i, x in enumerate(attributes)}
    row_idx = [attr_to_idx[int(x)] for x in attribute_index]
    rowsel = jnp.asarray(row_idx, dtype=jnp.float32).reshape(len(row_idx), 1)

    real_flat = _flatten_lane_dense(real_data.astype(jnp.float32))
    fake_flat = _flatten_lane_dense(fake_data.astype(jnp.float32))
    mean_f = mean.astype(jnp.float32)
    logvar_f = logvar.astype(jnp.float32)
    anchor_f = anchor.astype(jnp.float32)
    pos_f = positive.astype(jnp.float32)
    neg_f = negative.astype(jnp.float32)
    masks_f = masks.astype(jnp.float32)

    kernel = functools.partial(
        _loss_kernel,
        n_bce_elems=int(real_data.size),
        kl_beta=float(kl_beta),
        triplet_beta=float(triplet_beta),
        triplet_margin=float(triplet_margin),
        mask_regularization_beta=float(mask_regularization_beta),
        num_attributes=int(masks.shape[0]),
        compute_triplet=(float(triplet_beta) != 0.0),
    )

    total_bce = int(real_data.size)
    total_trip = int(anchor.size) * 3
    cost = pl.CostEstimate(
        flops=10 * total_bce + 32 * total_trip + 256,
        transcendentals=2 * total_bce + int(mean.size),
        bytes_accessed=4 * (int(real_flat.size) + int(fake_flat.size)
                            + int(mean.size) + int(logvar.size)
                            + total_trip + int(masks.size)
                            + int(rowsel.size)) + 32,
    )

    outs = pl.pallas_call(
        kernel,
        out_shape=jax.ShapeDtypeStruct((8,), jnp.float32),
        in_specs=[pl.BlockSpec(memory_space=pltpu.MemorySpace.VMEM)] * 9,
        out_specs=pl.BlockSpec(memory_space=pltpu.MemorySpace.SMEM),
        cost_estimate=cost,
    )(real_flat, fake_flat, mean_f, logvar_f, anchor_f, pos_f, neg_f,
      masks_f, rowsel)

    return outs[0], outs[1], outs[2], outs[3], outs[4]


def learned_masked_vae_triplet_loss(
        real_data, fake_data, mean, logvar,
        anchor, positive, negative, attribute_index, masks,
        *, kl_beta=1.0, triplet_beta=1.0, triplet_margin=1.0,
        mask_regularization_beta=1000.0, attributes=(0, 1)):
    """Returns (final, triplet, recon, kl, mask_reg) as f32 scalars.

    attribute_index must be a static Python sequence of attribute ids
    (matches the int()-based dict lookup in the PyTorch module).
    """
    return _forward(
        real_data, fake_data, mean, logvar, anchor, positive, negative, masks,
        attribute_index=tuple(int(x) for x in attribute_index),
        attributes=tuple(int(x) for x in attributes),
        kl_beta=float(kl_beta), triplet_beta=float(triplet_beta),
        triplet_margin=float(triplet_margin),
        mask_regularization_beta=float(mask_regularization_beta))


def _reference(real, fake, mean, logvar, a, p, n, attr_idx, masks,
               kl_beta=1.0, triplet_beta=1.0, triplet_margin=1.0,
               mask_reg_beta=1000.0, attributes=(0, 1)):
    """Plain-JAX reference mirroring the PyTorch forward."""
    log_f = jnp.maximum(jnp.log(fake), -100.0)
    log_1mf = jnp.maximum(jnp.log(1.0 - fake), -100.0)
    recon = jnp.mean(-(real * log_f + (1.0 - real) * log_1mf))
    kl = -0.5 * jnp.mean(1.0 + logvar - mean ** 2 - jnp.exp(logvar))
    attr_to_idx = {int(x): i for i, x in enumerate(attributes)}
    mg = masks[jnp.asarray([attr_to_idx[int(x)] for x in attr_idx])]
    pos_d = jnp.sum(mg * jnp.abs(a - p), axis=1)
    neg_d = jnp.sum(mg * jnp.abs(a - n), axis=1)
    trip = jnp.mean(jax.nn.relu(pos_d - neg_d + triplet_margin))
    mreg = jnp.mean(jnp.sum(jnp.abs(masks), axis=1))
    final = recon + kl_beta * kl + triplet_beta * trip + mask_reg_beta * mreg
    return final, trip, recon, kl, mreg


if __name__ == "__main__":
    key = jax.random.PRNGKey(0)
    B, C, H, W = 2, 4, 16, 16
    latent_dim = 2
    T = 8                       # number of triplets
    attributes = (0, 1)

    k = jax.random.split(key, 8)
    real_data = jax.random.uniform(k[0], (B, C, H, W), jnp.float32,
                                   minval=0.0, maxval=1.0)
    fake_data = jax.nn.sigmoid(jax.random.normal(k[1], (B, C, H, W),
                                                 jnp.float32))
    mean = jax.random.normal(k[2], (B, latent_dim), jnp.float32)
    logvar = 0.1 * jax.random.normal(k[3], (B, latent_dim), jnp.float32)

    # triplet_data after the module's anchor[0]/positive[0]/negative[0] step
    anchor = jax.random.normal(k[4], (T, latent_dim), jnp.float32)
    positive = jax.random.normal(k[5], (T, latent_dim), jnp.float32)
    negative = jax.random.normal(k[6], (T, latent_dim), jnp.float32)
    # attribute index per triplet (values from `attributes`), static list
    attribute_index = [0, 1, 0, 1, 1, 0, 0, 1]

    # nn.Parameter(torch.ones(num_attributes, latent_dim)) -> deterministic ones
    masks = jnp.ones((len(attributes), latent_dim), jnp.float32)

    out = learned_masked_vae_triplet_loss(
        real_data, fake_data, mean, logvar,
        anchor, positive, negative, attribute_index, masks,
        kl_beta=1.0, triplet_beta=1.0, triplet_margin=1.0,
        mask_regularization_beta=1000.0, attributes=attributes)
    out = jax.block_until_ready(out)

    ref = _reference(real_data, fake_data, mean, logvar,
                     anchor, positive, negative, attribute_index, masks)
    for got, want in zip(out, ref):
        assert jnp.allclose(got, want, rtol=1e-5, atol=1e-5), (got, want)

    print("KERNEL_OK")
</pallas_src>

<mosaic_0001>
module attributes {stable_mosaic.version = 11 : i64} {
  func.func @_loss_kernel(%arg0: memref<16x128xf32, #tpu.memory_space<vmem>>, %arg1: memref<16x128xf32, #tpu.memory_space<vmem>>, %arg2: memref<2x2xf32, #tpu.memory_space<vmem>>, %arg3: memref<2x2xf32, #tpu.memory_space<vmem>>, %arg4: memref<8x2xf32, #tpu.memory_space<vmem>>, %arg5: memref<8x2xf32, #tpu.memory_space<vmem>>, %arg6: memref<8x2xf32, #tpu.memory_space<vmem>>, %arg7: memref<2x2xf32, #tpu.memory_space<vmem>>, %arg8: memref<8x1xf32, #tpu.memory_space<vmem>>, %arg9: memref<8xf32, #tpu.memory_space<smem>>) attributes {dimension_semantics = [], scalar_prefetch = 0 : i64, scratch_operands = 0 : i64, tpu.core_type = #tpu.core_type<tc>} {
    %c0 = arith.constant 0 : index
    %c0_0 = arith.constant 0 : index
    %0 = vector.load %arg0[%c0, %c0_0] : memref<16x128xf32, #tpu.memory_space<vmem>>, vector<16x128xf32>
    %c0_1 = arith.constant 0 : index
    %c0_2 = arith.constant 0 : index
    %1 = vector.load %arg1[%c0_1, %c0_2] : memref<16x128xf32, #tpu.memory_space<vmem>>, vector<16x128xf32>
    %2 = math.log %1 : vector<16x128xf32>
    %cst = arith.constant -1.000000e+02 : f32
    %3 = vector.broadcast %cst : f32 to vector<16x128xf32>
    %4 = arith.maximumf %2, %3 : vector<16x128xf32>
    %cst_3 = arith.constant 1.000000e+00 : f32
    %5 = vector.broadcast %cst_3 : f32 to vector<16x128xf32>
    %6 = arith.subf %5, %1 : vector<16x128xf32>
    %7 = math.log %6 : vector<16x128xf32>
    %cst_4 = arith.constant -1.000000e+02 : f32
    %8 = vector.broadcast %cst_4 : f32 to vector<16x128xf32>
    %9 = arith.maximumf %7, %8 : vector<16x128xf32>
    %10 = arith.mulf %0, %4 : vector<16x128xf32>
    %cst_5 = arith.constant 1.000000e+00 : f32
    %11 = vector.broadcast %cst_5 : f32 to vector<16x128xf32>
    %12 = arith.subf %11, %0 : vector<16x128xf32>
    %13 = arith.mulf %12, %9 : vector<16x128xf32>
    %14 = arith.addf %10, %13 : vector<16x128xf32>
    %cst_6 = arith.constant 0.000000e+00 : f32
    %15 = vector.broadcast %cst_6 : f32 to vector<16x128xf32>
    %16 = arith.subf %15, %14 : vector<16x128xf32>
    %17 = vector.shape_cast %16 : vector<16x128xf32> to vector<1x16x128xf32>
    %cst_7 = arith.constant dense<0.000000e+00> : vector<1xf32>
    %18 = vector.multi_reduction <add>, %17, %cst_7 [1, 2] : vector<1x16x128xf32> to vector<1xf32>
    %19 = vector.shape_cast %18 : vector<1xf32> to vector<1x1x1xf32>
    %20 = vector.extract %19[0, 0, 0] : f32 from vector<1x1x1xf32>
    %cst_8 = arith.constant 4.8828125E-4 : f32
    %21 = arith.mulf %20, %cst_8 : f32
    %c0_9 = arith.constant 0 : index
    %c0_10 = arith.constant 0 : index
    %22 = vector.load %arg2[%c0_9, %c0_10] : memref<2x2xf32, #tpu.memory_space<vmem>>, vector<2x2xf32>
    %c0_11 = arith.constant 0 : index
    %c0_12 = arith.constant 0 : index
    %23 = vector.load %arg3[%c0_11, %c0_12] : memref<2x2xf32, #tpu.memory_space<vmem>>, vector<2x2xf32>
    %cst_13 = arith.constant 1.000000e+00 : f32
    %24 = vector.broadcast %cst_13 : f32 to vector<2x2xf32>
    %25 = arith.addf %24, %23 : vector<2x2xf32>
    %26 = arith.mulf %22, %22 : vector<2x2xf32>
    %27 = arith.subf %25, %26 : vector<2x2xf32>
    %28 = math.exp %23 : vector<2x2xf32>
    %29 = arith.subf %27, %28 : vector<2x2xf32>
    %30 = vector.shape_cast %29 : vector<2x2xf32> to vector<1x2x2xf32>
    %cst_14 = arith.constant dense<0.000000e+00> : vector<1xf32>
    %31 = vector.multi_reduction <add>, %30, %cst_14 [1, 2] : vector<1x2x2xf32> to vector<1xf32>
    %32 = vector.shape_cast %31 : vector<1xf32> to vector<1x1x1xf32>
    %33 = vector.extract %32[0, 0, 0] : f32 from vector<1x1x1xf32>
    %cst_15 = arith.constant 2.500000e-01 : f32
    %34 = arith.mulf %33, %cst_15 : f32
    %cst_16 = arith.constant -5.000000e-01 : f32
    %35 = arith.mulf %cst_16, %34 : f32
    %c0_17 = arith.constant 0 : index
    %c0_18 = arith.constant 0 : index
    %36 = vector.load %arg4[%c0_17, %c0_18] : memref<8x2xf32, #tpu.memory_space<vmem>>, vector<8x2xf32>
    %c0_19 = arith.constant 0 : index
    %c0_20 = arith.constant 0 : index
    %37 = vector.load %arg5[%c0_19, %c0_20] : memref<8x2xf32, #tpu.memory_space<vmem>>, vector<8x2xf32>
    %c0_21 = arith.constant 0 : index
    %c0_22 = arith.constant 0 : index
    %38 = vector.load %arg6[%c0_21, %c0_22] : memref<8x2xf32, #tpu.memory_space<vmem>>, vector<8x2xf32>
    %c0_23 = arith.constant 0 : index
    %c0_24 = arith.constant 0 : index
    %39 = vector.load %arg7[%c0_23, %c0_24] : memref<2x2xf32, #tpu.memory_space<vmem>>, vector<2x2xf32>
    %c0_25 = arith.constant 0 : index
    %c0_26 = arith.constant 0 : index
    %40 = vector.load %arg8[%c0_25, %c0_26] : memref<8x1xf32, #tpu.memory_space<vmem>>, vector<8x1xf32>
    %cst_27 = arith.constant 0.000000e+00 : f32
    %41 = vector.broadcast %cst_27 : f32 to vector<8x1xf32>
    %42 = arith.cmpf oeq, %40, %41 : vector<8x1xf32>
    %cst_28 = arith.constant 1.000000e+00 : f32
    %cst_29 = arith.constant 0.000000e+00 : f32
    %43 = vector.broadcast %cst_28 : f32 to vector<8x1xf32>
    %44 = vector.broadcast %cst_29 : f32 to vector<8x1xf32>
    %45 = arith.select %42, %43, %44 : vector<8x1xi1>, vector<8x1xf32>
    %46 = vector.extract_strided_slice %39 {offsets = [0, 0], sizes = [1, 2], strides = [1, 1]} : vector<2x2xf32> to vector<1x2xf32>
    %47 = vector.broadcast %45 : vector<8x1xf32> to vector<8x2xf32>
    %48 = vector.broadcast %46 : vector<1x2xf32> to vector<8x2xf32>
    %49 = arith.mulf %47, %48 : vector<8x2xf32>
    %cst_30 = arith.constant 1.000000e+00 : f32
    %50 = vector.broadcast %cst_30 : f32 to vector<8x1xf32>
    %51 = arith.cmpf oeq, %40, %50 : vector<8x1xf32>
    %cst_31 = arith.constant 1.000000e+00 : f32
    %cst_32 = arith.constant 0.000000e+00 : f32
    %52 = vector.broadcast %cst_31 : f32 to vector<8x1xf32>
    %53 = vector.broadcast %cst_32 : f32 to vector<8x1xf32>
    %54 = arith.select %51, %52, %53 : vector<8x1xi1>, vector<8x1xf32>
    %55 = vector.extract_strided_slice %39 {offsets = [1, 0], sizes = [1, 2], strides = [1, 1]} : vector<2x2xf32> to vector<1x2xf32>
    %56 = vector.broadcast %54 : vector<8x1xf32> to vector<8x2xf32>
    %57 = vector.broadcast %55 : vector<1x2xf32> to vector<8x2xf32>
    %58 = arith.mulf %56, %57 : vector<8x2xf32>
    %59 = arith.addf %49, %58 : vector<8x2xf32>
    %60 = arith.subf %36, %37 : vector<8x2xf32>
    %61 = math.absf %60 : vector<8x2xf32>
    %62 = arith.subf %36, %38 : vector<8x2xf32>
    %63 = math.absf %62 : vector<8x2xf32>
    %64 = arith.subf %61, %63 : vector<8x2xf32>
    %65 = arith.mulf %59, %64 : vector<8x2xf32>
    %66 = vector.extract_strided_slice %65 {offsets = [0, 0], sizes = [8, 1], strides = [1, 1]} : vector<8x2xf32> to vector<8x1xf32>
    %67 = vector.extract_strided_slice %65 {offsets = [0, 1], sizes = [8, 1], strides = [1, 1]} : vector<8x2xf32> to vector<8x1xf32>
    %68 = arith.addf %66, %67 : vector<8x1xf32>
    %cst_33 = arith.constant 1.000000e+00 : f32
    %69 = vector.broadcast %cst_33 : f32 to vector<8x1xf32>
    %70 = arith.addf %68, %69 : vector<8x1xf32>
    %cst_34 = arith.constant 0.000000e+00 : f32
    %71 = vector.broadcast %cst_34 : f32 to vector<8x1xf32>
    %72 = arith.maximumf %70, %71 : vector<8x1xf32>
    %73 = vector.shape_cast %72 : vector<8x1xf32> to vector<1x8x1xf32>
    %cst_35 = arith.constant dense<0.000000e+00> : vector<1xf32>
    %74 = vector.multi_reduction <add>, %73, %cst_35 [1, 2] : vector<1x8x1xf32> to vector<1xf32>
    %75 = vector.shape_cast %74 : vector<1xf32> to vector<1x1x1xf32>
    %76 = vector.extract %75[0, 0, 0] : f32 from vector<1x1x1xf32>
    %cst_36 = arith.constant 1.250000e-01 : f32
    %77 = arith.mulf %76, %cst_36 : f32
    %c0_37 = arith.constant 0 : index
    %c0_38 = arith.constant 0 : index
    %78 = vector.load %arg7[%c0_37, %c0_38] : memref<2x2xf32, #tpu.memory_space<vmem>>, vector<2x2xf32>
    %79 = math.absf %78 : vector<2x2xf32>
    %80 = vector.shape_cast %79 : vector<2x2xf32> to vector<1x2x2xf32>
    %cst_39 = arith.constant dense<0.000000e+00> : vector<1xf32>
    %81 = vector.multi_reduction <add>, %80, %cst_39 [1, 2] : vector<1x2x2xf32> to vector<1xf32>
    %82 = vector.shape_cast %81 : vector<1xf32> to vector<1x1x1xf32>
    %83 = vector.extract %82[0, 0, 0] : f32 from vector<1x1x1xf32>
    %cst_40 = arith.constant 5.000000e-01 : f32
    %84 = arith.mulf %83, %cst_40 : f32
    %cst_41 = arith.constant 1.000000e+00 : f32
    %85 = arith.mulf %cst_41, %35 : f32
    %86 = arith.addf %21, %85 : f32
    %cst_42 = arith.constant 1.000000e+00 : f32
    %87 = arith.mulf %cst_42, %77 : f32
    %88 = arith.addf %86, %87 : f32
    %cst_43 = arith.constant 1.000000e+03 : f32
    %89 = arith.mulf %cst_43, %84 : f32
    %90 = arith.addf %88, %89 : f32
    %c0_44 = arith.constant 0 : index
    %91 = memref.load %arg9[%c0_44] : memref<8xf32, #tpu.memory_space<smem>>
    memref.store %90, %arg9[%c0_44] : memref<8xf32, #tpu.memory_space<smem>>
    %c1 = arith.constant 1 : index
    %92 = memref.load %arg9[%c1] : memref<8xf32, #tpu.memory_space<smem>>
    memref.store %77, %arg9[%c1] : memref<8xf32, #tpu.memory_space<smem>>
    %c2 = arith.constant 2 : index
    %93 = memref.load %arg9[%c2] : memref<8xf32, #tpu.memory_space<smem>>
    memref.store %21, %arg9[%c2] : memref<8xf32, #tpu.memory_space<smem>>
    %c3 = arith.constant 3 : index
    %94 = memref.load %arg9[%c3] : memref<8xf32, #tpu.memory_space<smem>>
    memref.store %35, %arg9[%c3] : memref<8xf32, #tpu.memory_space<smem>>
    %c4 = arith.constant 4 : index
    %95 = memref.load %arg9[%c4] : memref<8xf32, #tpu.memory_space<smem>>
    memref.store %84, %arg9[%c4] : memref<8xf32, #tpu.memory_space<smem>>
    %cst_45 = arith.constant 0.000000e+00 : f32
    %c5 = arith.constant 5 : index
    %96 = memref.load %arg9[%c5] : memref<8xf32, #tpu.memory_space<smem>>
    memref.store %cst_45, %arg9[%c5] : memref<8xf32, #tpu.memory_space<smem>>
    %cst_46 = arith.constant 0.000000e+00 : f32
    %c6 = arith.constant 6 : index
    %97 = memref.load %arg9[%c6] : memref<8xf32, #tpu.memory_space<smem>>
    memref.store %cst_46, %arg9[%c6] : memref<8xf32, #tpu.memory_space<smem>>
    %cst_47 = arith.constant 0.000000e+00 : f32
    %c7 = arith.constant 7 : index
    %98 = memref.load %arg9[%c7] : memref<8xf32, #tpu.memory_space<smem>>
    memref.store %cst_47, %arg9[%c7] : memref<8xf32, #tpu.memory_space<smem>>
    return
  }
}

</mosaic_0001>

<bundles_post_ra>
// kernel: _forward.1
= control target key start
LH: loop header
LB: loop body
LE: loop exit
PB: predicated region body
PF: predicated region fallthrough
CT: control target
= control target key end

     0   :  { %v238_v1 = vmov 0   ;;  %s329_s0 = inlined_call_operand.vmem [shape: f32[16,128], index: 0, kind: input, shape index: {}]   ;;  %s330_s1 = inlined_call_operand.vmem [shape: f32[16,128], index: 1, kind: input, shape index: {}]   ;;  %s331_s2 = inlined_call_operand.vmem [shape: f32[2,2], index: 2, kind: input, shape index: {}]   ;;  %s332_s3 = inlined_call_operand.vmem [shape: f32[2,2], index: 3, kind: input, shape index: {}]   ;;  %s333_s4 = inlined_call_operand.vmem [shape: f32[8,2], index: 4, kind: input, shape index: {}]   ;;  %s334_s5 = inlined_call_operand.vmem [shape: f32[8,2], index: 5, kind: input, shape index: {}]   ;;  %s335_s6 = inlined_call_operand.vmem [shape: f32[8,2], index: 6, kind: input, shape index: {}]   ;;  %s336_s7 = inlined_call_operand.vmem [shape: f32[2,2], index: 7, kind: input, shape index: {}]   ;;  %s337_s8 = inlined_call_operand.vmem [shape: f32[8,1], index: 8, kind: input, shape index: {}]   ;;  %s338_s9 = inlined_call_operand.vmem [shape: f32[8], index: 9, kind: output, shape index: {}]  }
   0x1   :  { %v97_v0 = vld [vmem:[%s337_s8] sm:$0xff]  ;;  %208 = vset.pattern.permute.xlu0 %v238_v1 }
   0x2   :  { %vm98_vm0 = vcmp.eq.f32.partialorder %v97_v0, 0.0  ;;  %vm110_vm1 = vcmp.eq.f32.partialorder %v97_v0, 1.0 }
   0x3   :  { %14 = vsyncpa [#allocation3], 0  ;;  %v239_v2 = vmov 0.0   ;;  %v35_v6 = vld [vmem:[%s330_s1] sm:$0xff]  ;;  %v36_v7 = vld [vmem:[%s330_s1 + $0x8] sm:$0xff]  ;;  %vm80_vm2 = vcmask 9216   ;;  %v105_v44 = vlaneseq }
   0x4   :  { %v99_v3 = vsel %vm98_vm0, 1.0, %v239_v2  ;;  %v111_v4 = vsel %vm110_vm1, 1.0, %v239_v2  ;;  %214 = vlog2.f32 %v35_v6  ;;  %v43_v8 = vsub.f32 1.0, %v35_v6  ;;  %v73_v10 = vld [vmem:[%s332_s3] sm:$0x3]  ;;  %v34_v15 = vld [vmem:[%s329_s0 + $0x8] sm:$0xff] }
   0x5   :  { %v209_v5 = vpack.i.bf16 %v111_v4, %v99_v3  ;;  %216 = vlog2.f32 %v36_v7  ;;  %v44_v9 = vsub.f32 1.0, %v36_v7  ;;  %v77_v11 = vmul.f32 1.442695, %v73_v10  ;;  %v33_v13 = vld [vmem:[%s329_s0] sm:$0xff]  ;;  %s241_s29 = smov 0.0   ;;  %s186_s8 = sshll.u32 %s338_s9, 4  ;;  %s187_s8 = int_to_ptr.vmem [resolvable:$true] %s186_s8 }
   0x6   :  { %218 = vlog2.f32 %v43_v8  ;;  %v72_v19 = vld [vmem:[%s331_s2] sm:$0x3]  ;;  %v53_v23 = vsub.f32 1.0, %v33_v13  ;;  %v54_v26 = vsub.f32 1.0, %v34_v15  ;;  %v74_v29 = vadd.f32 1.0, %v73_v10  ;;  %175 = sst [smem:[#allocation2 + $0x5]] %s241_s29  ;;  %p229_p1 = scmp.lt.s32.totalorder %s187_s8, %s187_s8 }
   0x7   :  { %210 = vperm.xlu0 %208, %v209_v5   ;;  %220 = vlog2.f32 %v44_v9  ;;  %v75_v30 = vmul.f32 %v72_v19, %v72_v19  ;;  %v106_v45 = vshrl.u32 %v105_v44, 7  ;;  %v93_v46 = vld [vmem:[%s333_s4] sm:$0xff]  ;;  %s240_s4 = smov 127   ;;  %vm136_vm3 = vcmask 7168   ;;  %177 = sst [smem:[#allocation2 + $0x6]] %s241_s29 }
   0x8   :  { %222 = vpow2.f32 %v77_v11  ;;  %v94_v47 = vld [vmem:[%s334_s5] sm:$0xff]  ;;  %179 = sst [smem:[#allocation2 + $0x7]] %s241_s29  ;;  %s224_s18 = scalar_lea.vmem %s187_s8, 16 }
   0x9   :  { %v76_v36 = vsub.f32 %v74_v29, %v75_v30  ;;  %v95_v48 = vld [vmem:[%s335_s6] sm:$0xff]  ;;  %v107_v51 = vsub.s32 0, %v106_v45  ;;  %v119_v52 = vsub.s32 1, %v106_v45  ;;  %v123_v53 = vsub.f32 %v93_v46, %v94_v47  ;;  %p225_p0 = scmp.ne.s32.totalorder %s187_s8, %s224_s18  ;;  %p230_p2 = scmp.lt.s32.totalorder %s224_s18, %s224_s18 }
   0xa   :  { %v96_v49 = vld [vmem:[%s336_s7] sm:$0x3]  ;;  %v125_v54 = vsub.f32 %v93_v46, %v95_v48 }
   0xb   :  { %v148_v50 = vand.u32 2147483647, %v96_v49  ;;  %v108_v56 = vrot.slane %v96_v49, %v107_v51  ;;  %v120_v57 = vrot.slane %v96_v49, %v119_v52  ;;  %v124_v58 = vand.u32 2147483647, %v123_v53  ;;  %p231_p3 = por %p230_p2, %p229_p1 }
   0xc   :  { %v126_v59 = vand.u32 2147483647, %v125_v54 }
   0xd   :  { %v149_v55 = vsel %vm80_vm2, %v148_v50, 0.0  ;;  %p232_p4 = pnand %p231_p3, %p225_p0 }
   0xe   :  { %v127_v1 = vsub.f32 %v124_v58, %v126_v59 }
  0x11   :  { %v215_v12 = vpop.eup %214 }
  0x12   :  { %v217_v14 = vpop.eup %216  ;;  %v38_v16 = vmul.f32 0.6931472, %v215_v12 }
  0x13   :  { %v219_v17 = vpop.eup %218  ;;  %v40_v18 = vmul.f32 0.6931472, %v217_v14 }
  0x14   :  { %v221_v20 = vpop.eup %220  ;;  %v41_v21 = vmax.f32 %v38_v16, -100.0  ;;  %v46_v22 = vmul.f32 0.6931472, %v219_v17 }
  0x15   :  { %v42_v24 = vmax.f32 %v40_v18, -100.0  ;;  %v48_v25 = vmul.f32 0.6931472, %v221_v20  ;;  %v223_v37 = vpop.eup %222 }
  0x16   :  { %v49_v27 = vmax.f32 %v46_v22, -100.0  ;;  %v51_v28 = vmul.f32 %v41_v21, %v33_v13  ;;  %v79_v41 = vsub.f32 %v76_v36, %v223_v37 }
  0x17   :  { %v50_v31 = vmax.f32 %v48_v25, -100.0  ;;  %v52_v32 = vmul.f32 %v42_v24, %v34_v15 }
  0x18   :  { %v55_v33 = vmul.f32 %v53_v23, %v49_v27  ;;  %v81_v43 = vsel %vm80_vm2, %v79_v41, 0.0 }
  0x19   :  { %v56_v34 = vmul.f32 %v54_v26, %v50_v31 }
  0x1a   :  { %v57_v35 = vadd.f32 %v55_v33, %v51_v28 }
  0x1b   :  { %v58_v38 = vadd.f32 %v56_v34, %v52_v32 }
  0x1c   :  { %v59_v39 = vsub.f32 0.0, %v57_v35 }
  0x1d   :  { %v60_v40 = vsub.f32 0.0, %v58_v38 }
  0x1f   :  { %v61_v42 = vadd.f32 %v60_v40, %v59_v39 }
  0x21   :  { %62 = vadd.xlane.f32.xlu1 %v61_v42 }
  0x25   :  { %82 = vadd.xlane.f32.xlu1 %v81_v43 }
  0x29   :  { %150 = vadd.xlane.f32.xlu1 %v149_v55 }
  0x82   :  { %v211_v60 = vpop.permute.xlu0 %210 }
  0x83   :  { %v213_v61 = vunpack.i.h.bf16 %v211_v60  ;;  %v212_v62 = vunpack.i.l.bf16 %v211_v60 }
  0x85   :  { %v109_v63 = vmul.f32 %v212_v62, %v108_v56  ;;  %v121_v0 = vmul.f32 %v213_v61, %v120_v57 }
  0x87   :  { %v122_v2 = vadd.f32 %v121_v0, %v109_v63 }
  0x89   :  { %v128_v3 = vmul.f32 %v127_v1, %v122_v2 }
  0x8b   :  { %130 = vrot.lane.b32.xlu0 %v128_v3, %s240_s4 }
  0xaa   :  { %v63_v4 = vpop.xlane.xlu1 %62 }
  0xab   :  { %v64_v5 = vrot.slane %v63_v4, 4 }
  0xad   :  { %v65_v6 = vadd.f32 %v64_v5, %v63_v4 }
  0xae   :  { %v83_v7 = vpop.xlane.xlu1 %82 }
  0xaf   :  { %v66_v8 = vrot.slane %v65_v6, 2  ;;  %v84_v9 = vrot.slane %v83_v7, 4 }
  0xb1   :  { %v85_v10 = vadd.f32 %v84_v9, %v83_v7  ;;  %v67_v11 = vadd.f32 %v66_v8, %v65_v6 }
  0xb2   :  { %v151_v23 = vpop.xlane.xlu1 %150 }
  0xb3   :  { %v86_v12 = vrot.slane %v85_v10, 2  ;;  %v68_v13 = vrot.slane %v67_v11, 1  ;;  %v152_v24 = vrot.slane %v151_v23, 4 }
  0xb5   :  { %v69_v14 = vadd.f32 %v68_v13, %v67_v11  ;;  %v87_v15 = vadd.f32 %v86_v12, %v85_v10  ;;  %v153_v25 = vadd.f32 %v152_v24, %v151_v23 }
  0xb7   :  { %195 = vpush %v69_v14  ;;  %v88_v16 = vrot.slane %v87_v15, 1  ;;  %v154_v26 = vrot.slane %v153_v25, 2 }
  0xb9   :  { %v89_v17 = vadd.f32 %v88_v16, %v87_v15  ;;  %v155_v30 = vadd.f32 %v154_v26, %v153_v25 }
  0xbb   :  { %197 = vpush %v89_v17  ;;  %v156_v33 = vrot.slane %v155_v30, 1 }
  0xbd   :  { %v157_v36 = vadd.f32 %v156_v33, %v155_v30 }
  0xe8   :  { %s196_s5 = spop %195 }
  0xe9   :  { %s71_s6 = smul.f32 0.00048828125, %s196_s5 }
  0xeb   :  { %169 = sst [smem:[#allocation2 + $0x2]] %s71_s6 }
  0xec   :  { %s198_s7 = spop %197 }
  0xed   :  { %s91_s26 = smul.f32 0.25, %s198_s7 }
  0xef   :  { %s92_s27 = smul.f32 -0.5, %s91_s26 }
  0xf1   :  { %s160_s28 = sadd.f32 %s92_s27, %s71_s6 }
  0xf2   :  { %171 = sst [smem:[#allocation2 + $0x3]] %s92_s27 }
  0xfd   :  { %v131_v18 = vpop.permute.xlu0 %130 }
  0xfe   :  { %v133_v19 = vadd.f32 %v131_v18, %v128_v3 }
 0x100   :  { %v134_v20 = vadd.f32 1.0, %v133_v19 }
 0x102   :  { %v135_v21 = vmax.f32 %v134_v20, 0.0 }
 0x104   :  { %v137_v22 = vsel %vm136_vm3, %v135_v21, 0.0 }
 0x105   :  { %138 = vadd.xlane.f32.xlu0 %v137_v22 }
 0x18e   :  { %v139_v27 = vpop.xlane.xlu0 %138 }
 0x18f   :  { %v140_v28 = vrot.slane %v139_v27, 4 }
 0x191   :  { %v141_v29 = vadd.f32 %v140_v28, %v139_v27 }
 0x193   :  { %v142_v31 = vrot.slane %v141_v29, 2 }
 0x195   :  { %v143_v32 = vadd.f32 %v142_v31, %v141_v29 }
 0x197   :  { %v144_v34 = vrot.slane %v143_v32, 1 }
 0x199   :  { %v145_v35 = vadd.f32 %v144_v34, %v143_v32 }
 0x19b   :  { %199 = vpush %v145_v35 }
 0x19c   :  { %201 = vpush %v157_v36 }
 0x1cc   :  { %s200_s30 = spop %199 }
 0x1cd   :  { %s147_s10 = smul.f32 0.125, %s200_s30  ;;  %s202_s11 = spop %201 }
 0x1ce   :  { %s159_s12 = smul.f32 0.5, %s202_s11 }
 0x1cf   :  { %s161_s15 = sadd.f32 %s160_s28, %s147_s10 }
 0x1d0   :  { %167 = sst [smem:[#allocation2 + $0x1]] %s147_s10  ;;  %s162_s16 = smul.f32 1000.0, %s159_s12 }
 0x1d1   :  { %173 = sst [smem:[#allocation2 + $0x4]] %s159_s12 }
 0x1d2   :  { %s163_s17 = sadd.f32 %s162_s16, %s161_s15 }
 0x1d4   :  { %165 = sst [smem:[#allocation2]] %s163_s17 }
 0x1d5   :  { %235 = shalt.err (!%p232_p4)
}
 0x1d6   :  { %s242_s1 = smov [#allocation2]  }
 0x1d7   :  { %189 = dma.smem_to_vmem %s242_s1, 16, %s187_s8, [#allocation3]  }
 0x1d8   :  { %236 = dma.done.wait [#allocation3], 16  }
 0x1d9   :  { %237 = vsyncadd [#allocation3], 4294967280 }
 0x1da   :  { %193 = sfence }
 0x1db   :  { %194 = vsyncpa [#allocation3], 1 }

</bundles_post_ra>
